<compile_context>
chip_gen: v6e
topology: v6e:2x2x1
jax: 0.10.0
libtpu: 0.0.40
codegen_flags: <defaults>
</compile_context>

<pallas_src>
import functools

import jax
import jax.numpy as jnp
from jax.experimental import pallas as pl
from jax.experimental.pallas import tpu as pltpu

_DEFAULT_TILE_TARGET_BYTES = 2 * 1024 * 1024   # target VMEM bytes per input tile
_MAX_BATCH_PACK = 256                          # cap on matrices packed per step
_VMEM_LIMIT_BYTES = 32 * 1024 * 1024


def _round_up(x: int, m: int) -> int:
    return ((x + m - 1) // m) * m


def _loss_terms(p_f32):
    """2*sum|p| - sum(row L2) - sum(col L2) for one (N, N) f32 matrix."""
    p_abs = jnp.abs(p_f32)
    p_sq = p_f32 * p_f32
    row_sq = jnp.sum(p_sq, axis=1, keepdims=True)    # (N, 1)
    col_sq = jnp.sum(p_sq, axis=0, keepdims=True)    # (1, N)
    return (2.0 * jnp.sum(p_abs)
            - jnp.sum(jnp.sqrt(row_sq))
            - jnp.sum(jnp.sqrt(col_sq)))


def _batched_kernel(p_ref, o_ref, *, tb):
    # p_ref: (tb, N, N) native dtype in VMEM; o_ref: (tb, 1) f32 in SMEM.
    # Cast to f32 happens here (on-chip), not in the wrapper.
    for t in range(tb):
        p = p_ref[t].astype(jnp.float32)
        o_ref[t, 0] = _loss_terms(p)


def _row_tiled_kernel(p_ref, o_ref, col_sq_ref, acc_ref, *, tm, n_rows, ragged):
    # p_ref     : (1, tm, N) native dtype in VMEM (row tile of one batch element)
    # o_ref     : (1, 1) f32 in SMEM (same block for all row tiles of this batch)
    # col_sq_ref: (1, N) f32 VMEM scratch -- running column sums of p^2
    # acc_ref   : (1, 1) f32 VMEM scratch -- running 2*sum|p| - sum(row L2)
    r = pl.program_id(1)

    @pl.when(r == 0)
    def _init():
        col_sq_ref[...] = jnp.zeros_like(col_sq_ref)
        acc_ref[...] = jnp.zeros_like(acc_ref)

    p = p_ref[0].astype(jnp.float32)                       # (tm, N)
    if ragged:  # last row tile sticks out past N: zero the padding rows
        row_ids = jax.lax.broadcasted_iota(jnp.int32, (tm, 1), 0) + r * tm
        p = jnp.where(row_ids < n_rows, p, 0.0)

    p_abs = jnp.abs(p)
    p_sq = p * p
    row_sq = jnp.sum(p_sq, axis=1, keepdims=True)          # (tm, 1)
    col_sq_ref[...] = col_sq_ref[...] + jnp.sum(p_sq, axis=0, keepdims=True)
    acc_ref[...] = acc_ref[...] + (2.0 * jnp.sum(p_abs)
                                   - jnp.sum(jnp.sqrt(row_sq)))

    @pl.when(r == pl.num_programs(1) - 1)
    def _finalize():
        o_ref[0, 0] = jnp.sum(acc_ref[...]) - jnp.sum(jnp.sqrt(col_sq_ref[...]))


def permutation_matrix_loss(p: jax.Array,
                            *,
                            tile_target_bytes: int = _DEFAULT_TILE_TARGET_BYTES
                            ) -> jax.Array:
    """Pallas implementation of PermutationMatrixLoss.forward.

    p: (B, N, N) floating point. Returns float32 loss: shape (B,) for B > 1,
    scalar for B == 1 (matching torch.squeeze of the (B, 1, 1) loss).
    """
    B, N, N2 = p.shape
    assert N == N2, "p must be (B, N, N)"
    p = jnp.asarray(p)
    itemsize = jnp.dtype(p.dtype).itemsize
    # Approximate VMEM footprint of one (N, N) matrix at this dtype (lane/sublane padded).
    mat_vmem_bytes = _round_up(N, 8) * _round_up(N, 128) * itemsize

    if mat_vmem_bytes <= tile_target_bytes:
        # ---- small-matrix path: pack `tb` whole matrices per grid step ----
        tb_cap = max(1, min(_MAX_BATCH_PACK, tile_target_bytes // mat_vmem_bytes))
        tb = 1
        for d in range(min(B, tb_cap), 0, -1):
            if B % d == 0:
                tb = d
                break
        out = pl.pallas_call(
            functools.partial(_batched_kernel, tb=tb),
            out_shape=jax.ShapeDtypeStruct((B, 1), jnp.float32),
            grid=(B // tb,),
            in_specs=[pl.BlockSpec((tb, N, N), lambda i: (i, 0, 0))],
            out_specs=pl.BlockSpec((tb, 1), lambda i: (i, 0),
                                   memory_space=pltpu.SMEM),
            compiler_params=pltpu.CompilerParams(
                dimension_semantics=("parallel",),
                vmem_limit_bytes=_VMEM_LIMIT_BYTES),
        )(p)
    else:
        # ---- large-matrix path: row tiles + column-sum accumulator ----
        row_bytes = _round_up(N, 128) * itemsize
        tm = max(8, (tile_target_bytes // row_bytes) // 8 * 8)
        tm = min(tm, N)                       # multiple of 8, or the full dim
        n_row_tiles = pl.cdiv(N, tm)
        ragged = (N % tm) != 0
        out = pl.pallas_call(
            functools.partial(_row_tiled_kernel, tm=tm, n_rows=N, ragged=ragged),
            out_shape=jax.ShapeDtypeStruct((B, 1), jnp.float32),
            grid=(B, n_row_tiles),
            in_specs=[pl.BlockSpec((1, tm, N), lambda b, r: (b, r, 0))],
            out_specs=pl.BlockSpec((1, 1), lambda b, r: (b, 0),
                                   memory_space=pltpu.SMEM),
            scratch_shapes=[pltpu.VMEM((1, N), jnp.float32),
                            pltpu.VMEM((1, 1), jnp.float32)],
            compiler_params=pltpu.CompilerParams(
                dimension_semantics=("parallel", "arbitrary"),
                vmem_limit_bytes=_VMEM_LIMIT_BYTES),
        )(p)

    # Matches torch.squeeze on the (B, 1, 1) unsqueezed loss.
    return jnp.squeeze(out)


def _reference_loss(p: jax.Array) -> jax.Array:
    p = p.astype(jnp.float32)
    p_abs = jnp.abs(p)
    p_sq = p * p
    row_l1 = jnp.sum(p_abs, axis=2)
    col_l1 = jnp.sum(p_abs, axis=1)
    row_l2 = jnp.sqrt(jnp.sum(p_sq, axis=2))
    col_l2 = jnp.sqrt(jnp.sum(p_sq, axis=1))
    loss = jnp.sum(row_l1 - row_l2, axis=1) + jnp.sum(col_l1 - col_l2, axis=1)
    return jnp.squeeze(loss)


if __name__ == "__main__":
    key = jax.random.PRNGKey(0)

    # Primary case: small matrices, whole batch packed into a single grid step.
    B, N = 2, 16
    p = jax.random.normal(key, (B, N, N), dtype=jnp.float32)
    out = jax.block_until_ready(permutation_matrix_loss(p))
    ref = jax.block_until_ready(_reference_loss(p))
    assert out.shape == ref.shape, (out.shape, ref.shape)
    assert jnp.allclose(out, ref, rtol=1e-5, atol=1e-4), (out, ref)

    # Multi-step batch-packed path (forced small tile target -> 2 matrices/step).
    p2 = jax.random.normal(jax.random.fold_in(key, 1), (4, 16, 16), jnp.float32)
    out2 = jax.block_until_ready(
        permutation_matrix_loss(p2, tile_target_bytes=16 * 1024))
    ref2 = jax.block_until_ready(_reference_loss(p2))
    assert jnp.allclose(out2, ref2, rtol=1e-5, atol=1e-4), (out2, ref2)

    # Row-tiled path with a ragged last row tile (forced tiny tile target).
    p3 = jax.random.normal(jax.random.fold_in(key, 2), (2, 44, 44), jnp.float32)
    out3 = jax.block_until_ready(
        permutation_matrix_loss(p3, tile_target_bytes=4 * 1024))
    ref3 = jax.block_until_ready(_reference_loss(p3))
    assert jnp.allclose(out3, ref3, rtol=1e-5, atol=1e-4), (out3, ref3)

    # bf16 input accepted directly (cast happens in-kernel, halving HBM reads).
    p4 = p.astype(jnp.bfloat16)
    out4 = jax.block_until_ready(permutation_matrix_loss(p4))
    ref4 = jax.block_until_ready(_reference_loss(p4.astype(jnp.float32)))
    assert jnp.allclose(out4, ref4, rtol=1e-4, atol=1e-3), (out4, ref4)

    print("KERNEL_OK")
</pallas_src>

<mosaic_0001>
module attributes {stable_mosaic.version = 11 : i64} {
  func.func @_batched_kernel(%arg0: i32, %arg1: memref<2x16x16xf32, #tpu.memory_space<vmem>>, %arg2: memref<2x1xf32, #tpu.memory_space<smem>>) attributes {dimension_semantics = [#tpu.dimension_semantics<parallel>], iteration_bounds = array<i64: 1>, scalar_prefetch = 0 : i64, scratch_operands = 0 : i64, tpu.core_type = #tpu.core_type<tc>, window_params = [{transform_indices = @transform_0, window_bounds = array<i64: 2, 16, 16>}, {transform_indices = @transform_1, window_bounds = array<i64: 2, 1>}]} {
    %c0 = arith.constant 0 : index
    %c0_0 = arith.constant 0 : index
    %c0_1 = arith.constant 0 : index
    %0 = vector.load %arg1[%c0, %c0_0, %c0_1] : memref<2x16x16xf32, #tpu.memory_space<vmem>>, vector<1x16x16xf32>
    %1 = vector.shape_cast %0 : vector<1x16x16xf32> to vector<16x16xf32>
    %2 = math.absf %1 : vector<16x16xf32>
    %3 = arith.mulf %1, %1 : vector<16x16xf32>
    %cst = arith.constant dense<0.000000e+00> : vector<16xf32>
    %4 = vector.multi_reduction <add>, %3, %cst [1] : vector<16x16xf32> to vector<16xf32>
    %5 = vector.shape_cast %4 : vector<16xf32> to vector<16x1xf32>
    %cst_2 = arith.constant dense<0.000000e+00> : vector<16xf32>
    %6 = vector.multi_reduction <add>, %3, %cst_2 [0] : vector<16x16xf32> to vector<16xf32>
    %7 = vector.shape_cast %6 : vector<16xf32> to vector<1x16xf32>
    %8 = vector.shape_cast %2 : vector<16x16xf32> to vector<1x16x16xf32>
    %cst_3 = arith.constant dense<0.000000e+00> : vector<1xf32>
    %9 = vector.multi_reduction <add>, %8, %cst_3 [1, 2] : vector<1x16x16xf32> to vector<1xf32>
    %10 = vector.shape_cast %9 : vector<1xf32> to vector<1x1x1xf32>
    %11 = vector.extract %10[0, 0, 0] : f32 from vector<1x1x1xf32>
    %cst_4 = arith.constant 2.000000e+00 : f32
    %12 = arith.mulf %cst_4, %11 : f32
    %13 = math.sqrt %5 : vector<16x1xf32>
    %14 = vector.shape_cast %13 : vector<16x1xf32> to vector<1x16x1xf32>
    %cst_5 = arith.constant dense<0.000000e+00> : vector<1xf32>
    %15 = vector.multi_reduction <add>, %14, %cst_5 [1, 2] : vector<1x16x1xf32> to vector<1xf32>
    %16 = vector.shape_cast %15 : vector<1xf32> to vector<1x1x1xf32>
    %17 = vector.extract %16[0, 0, 0] : f32 from vector<1x1x1xf32>
    %18 = arith.subf %12, %17 : f32
    %19 = math.sqrt %7 : vector<1x16xf32>
    %20 = vector.shape_cast %19 : vector<1x16xf32> to vector<1x1x16xf32>
    %cst_6 = arith.constant dense<0.000000e+00> : vector<1xf32>
    %21 = vector.multi_reduction <add>, %20, %cst_6 [1, 2] : vector<1x1x16xf32> to vector<1xf32>
    %22 = vector.shape_cast %21 : vector<1xf32> to vector<1x1x1xf32>
    %23 = vector.extract %22[0, 0, 0] : f32 from vector<1x1x1xf32>
    %24 = arith.subf %18, %23 : f32
    %c0_7 = arith.constant 0 : index
    %c0_8 = arith.constant 0 : index
    %25 = memref.load %arg2[%c0_7, %c0_8] : memref<2x1xf32, #tpu.memory_space<smem>>
    memref.store %24, %arg2[%c0_7, %c0_8] : memref<2x1xf32, #tpu.memory_space<smem>>
    %c1 = arith.constant 1 : index
    %c0_9 = arith.constant 0 : index
    %c0_10 = arith.constant 0 : index
    %26 = vector.load %arg1[%c1, %c0_9, %c0_10] : memref<2x16x16xf32, #tpu.memory_space<vmem>>, vector<1x16x16xf32>
    %27 = vector.shape_cast %26 : vector<1x16x16xf32> to vector<16x16xf32>
    %28 = math.absf %27 : vector<16x16xf32>
    %29 = arith.mulf %27, %27 : vector<16x16xf32>
    %cst_11 = arith.constant dense<0.000000e+00> : vector<16xf32>
    %30 = vector.multi_reduction <add>, %29, %cst_11 [1] : vector<16x16xf32> to vector<16xf32>
    %31 = vector.shape_cast %30 : vector<16xf32> to vector<16x1xf32>
    %cst_12 = arith.constant dense<0.000000e+00> : vector<16xf32>
    %32 = vector.multi_reduction <add>, %29, %cst_12 [0] : vector<16x16xf32> to vector<16xf32>
    %33 = vector.shape_cast %32 : vector<16xf32> to vector<1x16xf32>
    %34 = vector.shape_cast %28 : vector<16x16xf32> to vector<1x16x16xf32>
    %cst_13 = arith.constant dense<0.000000e+00> : vector<1xf32>
    %35 = vector.multi_reduction <add>, %34, %cst_13 [1, 2] : vector<1x16x16xf32> to vector<1xf32>
    %36 = vector.shape_cast %35 : vector<1xf32> to vector<1x1x1xf32>
    %37 = vector.extract %36[0, 0, 0] : f32 from vector<1x1x1xf32>
    %cst_14 = arith.constant 2.000000e+00 : f32
    %38 = arith.mulf %cst_14, %37 : f32
    %39 = math.sqrt %31 : vector<16x1xf32>
    %40 = vector.shape_cast %39 : vector<16x1xf32> to vector<1x16x1xf32>
    %cst_15 = arith.constant dense<0.000000e+00> : vector<1xf32>
    %41 = vector.multi_reduction <add>, %40, %cst_15 [1, 2] : vector<1x16x1xf32> to vector<1xf32>
    %42 = vector.shape_cast %41 : vector<1xf32> to vector<1x1x1xf32>
    %43 = vector.extract %42[0, 0, 0] : f32 from vector<1x1x1xf32>
    %44 = arith.subf %38, %43 : f32
    %45 = math.sqrt %33 : vector<1x16xf32>
    %46 = vector.shape_cast %45 : vector<1x16xf32> to vector<1x1x16xf32>
    %cst_16 = arith.constant dense<0.000000e+00> : vector<1xf32>
    %47 = vector.multi_reduction <add>, %46, %cst_16 [1, 2] : vector<1x1x16xf32> to vector<1xf32>
    %48 = vector.shape_cast %47 : vector<1xf32> to vector<1x1x1xf32>
    %49 = vector.extract %48[0, 0, 0] : f32 from vector<1x1x1xf32>
    %50 = arith.subf %44, %49 : f32
    %c1_17 = arith.constant 1 : index
    %c0_18 = arith.constant 0 : index
    %51 = memref.load %arg2[%c1_17, %c0_18] : memref<2x1xf32, #tpu.memory_space<smem>>
    memref.store %50, %arg2[%c1_17, %c0_18] : memref<2x1xf32, #tpu.memory_space<smem>>
    return
  }
  func.func @transform_0(%arg0: i32) -> (i32, i32, i32) {
    %c0_i32 = arith.constant 0 : i32
    %c0_i32_0 = arith.constant 0 : i32
    %c0_i32_1 = arith.constant 0 : i32
    return %arg0, %c0_i32, %c0_i32_0 : i32, i32, i32
  }
  func.func @transform_1(%arg0: i32) -> (i32, i32) {
    %c0_i32 = arith.constant 0 : i32
    %c0_i32_0 = arith.constant 0 : i32
    return %arg0, %c0_i32 : i32, i32
  }
}

</mosaic_0001>

<bundles_post_ra>
// kernel: tpu_custom_call.1
= control target key start
LH: loop header
LB: loop body
LE: loop exit
PB: predicated region body
PF: predicated region fallthrough
CT: control target
= control target key end

     0   :  { %6 = vsyncpa [#allocation3], 0  ;;  %s297_s0 = inlined_call_operand.hbm [shape: f32[2,16,16], index: 0, kind: input, shape index: {}]   ;;  %s298_s1 = inlined_call_operand.vmem [shape: f32[2,1], index: 1, kind: output, shape index: {}]  }
   0x1   :  { %7 = vsyncpa [#allocation4], 0  ;;  %s265_s6 = smov [#allocation2]  }
   0x2   :  { %s13_s7 = sshll.u32 %s265_s6, 4  ;;  %s14_s7 = int_to_ptr.vmem [resolvable:$true] %s13_s7 }
   0x3   :  { %s237_s8 = scalar_lea.vmem %s14_s7, 512  ;;  %p242_p1 = scmp.lt.s32.totalorder %s14_s7, %s14_s7 }
   0x4   :  { %p238_p0 = scmp.ne.s32.totalorder %s14_s7, %s237_s8  ;;  %p243_p2 = scmp.lt.s32.totalorder %s237_s8, %s237_s8 }
   0x6   :  { %p244_p3 = por %p243_p2, %p242_p1 }
   0x8   :  { %p245_p4 = pnand %p244_p3, %p238_p0 }
   0xa   :  { %248 = shalt.err (!%p245_p4)
}
   0xb   :  { %s266_s9 = smov 128   ;;  %s267_s10 = smov 8  }
   0xc   :  { %19 = dma.hbm_to_vmem [thread:$0]  %s297_s0, 512, %s14_s7, [#allocation3], %s266_s9, %s266_s9, %s267_s10  }
   0xd   :  { %261 = dma.done.wait [#allocation3], 512  }
   0xe   :  { %262 = vsyncadd [#allocation3], 4294966784  ;;  %vm29_vm0 = vcmask 130048   ;;  %v106_v0 = vld [vmem:[#allocation2 + $0x10] sm:$0xff]  ;;  %v23_v1 = vld [vmem:[#allocation2] sm:$0xff]  ;;  %vm91_vm3 = vcmask 122880  }
   0xf   :  { %v107_v2 = vld [vmem:[#allocation2 + $0x18] sm:$0xff]  ;;  %v110_v3 = vmul.f32 %v106_v0, %v106_v0  ;;  %v27_v4 = vmul.f32 %v23_v1, %v23_v1  ;;  %v24_v6 = vld [vmem:[#allocation2 + $0x8] sm:$0xff]  ;;  %v25_v25 = vand.u32 2147483647, %v23_v1  ;;  %v108_v27 = vand.u32 2147483647, %v106_v0 }
  0x10   :  { %v111_v5 = vmul.f32 %v107_v2, %v107_v2  ;;  %v28_v7 = vmul.f32 %v24_v6, %v24_v6  ;;  %v26_v26 = vand.u32 2147483647, %v24_v6  ;;  %v109_v28 = vand.u32 2147483647, %v107_v2  ;;  %s191_s23 = sshll.u32 %s298_s1, 4  ;;  %s192_s23 = int_to_ptr.vmem [resolvable:$true] %s191_s23 }
  0x11   :  { %v112_v8 = vsel %vm29_vm0, %v110_v3, 0.0  ;;  %v30_v9 = vsel %vm29_vm0, %v27_v4, 0.0  ;;  %v43_v30 = vsel %vm29_vm0, %v25_v25, 0.0  ;;  %v125_v32 = vsel %vm29_vm0, %v108_v27, 0.0  ;;  %s249_s27 = scalar_lea.vmem %s192_s23, 32  ;;  %p254_p6 = scmp.lt.s32.totalorder %s192_s23, %s192_s23 }
  0x12   :  { %v115_v10 = vsel %vm29_vm0, %v111_v5, 0.0  ;;  %113 = vadd.xlane.f32.xlu1 %v112_v8  ;;  %31 = vadd.xlane.f32.xlu0 %v30_v9  ;;  %v33_v12 = vsel %vm29_vm0, %v28_v7, 0.0  ;;  %v44_v31 = vsel %vm29_vm0, %v26_v26, 0.0  ;;  %v126_v34 = vsel %vm29_vm0, %v109_v28, 0.0  ;;  %p250_p5 = scmp.ne.s32.totalorder %s192_s23, %s249_s27  ;;  %p255_p7 = scmp.lt.s32.totalorder %s249_s27, %s249_s27 }
  0x13   :  { %v118_v11 = vadd.f32 %v115_v10, %v112_v8  ;;  %v36_v13 = vadd.f32 %v33_v12, %v30_v9  ;;  %v45_v33 = vadd.f32 %v44_v31, %v43_v30  ;;  %v127_v35 = vadd.f32 %v126_v34, %v125_v32 }
  0x14   :  { %vm70_vm8 = vcmask 7168   ;;  %p256_p8 = por %p255_p7, %p254_p6 }
  0x15   :  { %v119_v14 = vrot.slane %v118_v11, 4  ;;  %v37_v15 = vrot.slane %v36_v13, 4 }
  0x16   :  { %116 = vadd.xlane.f32.xlu1 %v115_v10  ;;  %34 = vadd.xlane.f32.xlu0 %v33_v12  ;;  %p257_p9 = pnand %p256_p8, %p250_p5 }
  0x17   :  { %v120_v16 = vadd.f32 %v119_v14, %v118_v11  ;;  %v38_v17 = vadd.f32 %v37_v15, %v36_v13 }
  0x19   :  { %v121_v18 = vrot.slane %v120_v16, 2  ;;  %v39_v19 = vrot.slane %v38_v17, 2 }
  0x1a   :  { %46 = vadd.xlane.f32.xlu0 %v45_v33  ;;  %128 = vadd.xlane.f32.xlu1 %v127_v35 }
  0x1b   :  { %v122_v20 = vadd.f32 %v121_v18, %v120_v16  ;;  %v40_v21 = vadd.f32 %v39_v19, %v38_v17 }
  0x1d   :  { %v41_v22 = vrot.slane %v40_v21, 1  ;;  %v123_v23 = vrot.slane %v122_v20, 1 }
  0x1f   :  { %v42_v24 = vadd.f32 %v41_v22, %v40_v21  ;;  %v124_v29 = vadd.f32 %v123_v23, %v122_v20 }
  0x21   :  { %217 = vrsqrt.f32 %v42_v24  ;;  %vm86_vm1 = vcmp.eq.f32.partialorder %v42_v24, inf  ;;  %v89_v37 = vand.u32 2147483648, %v42_v24  ;;  %vm88_vm2 = vcmp.eq.f32.partialorder %v42_v24, 0.0 }
  0x22   :  { %219 = vrsqrt.f32 %v124_v29  ;;  %vm167_vm4 = vcmp.eq.f32.partialorder %v124_v29, inf  ;;  %vm169_vm5 = vcmp.eq.f32.partialorder %v124_v29, 0.0  ;;  %v170_v44 = vand.u32 2147483648, %v124_v29 }
  0x2e   :  { %v218_v36 = vpop.eup %217 }
  0x2f   :  { %v85_v38 = vmul.f32 %v218_v36, %v42_v24  ;;  %v220_v42 = vpop.eup %219 }
  0x30   :  { %v166_v43 = vmul.f32 %v220_v42, %v124_v29 }
  0x31   :  { %v87_v39 = vsel %vm86_vm1, %v42_v24, %v85_v38 }
  0x32   :  { %v90_v40 = vsel %vm88_vm2, %v89_v37, %v87_v39  ;;  %v168_v45 = vsel %vm167_vm4, %v124_v29, %v166_v43 }
  0x33   :  { %v92_v41 = vsel %vm91_vm3, %v90_v40, 0.0  ;;  %v171_v46 = vsel %vm169_vm5, %v170_v44, %v168_v45 }
  0x34   :  { %93 = vadd.xlane.f32.xlu0 %v92_v41  ;;  %v172_v47 = vsel %vm91_vm3, %v171_v46, 0.0 }
  0x9b   :  { %v114_v48 = vpop.xlane.xlu1 %113  ;;  %v32_v49 = vpop.xlane.xlu0 %31 }
  0x9c   :  { %221 = vrsqrt.f32 %v114_v48  ;;  %vm140_vm6 = vcmp.eq.f32.partialorder %v114_v48, inf  ;;  %vm58_vm7 = vcmp.eq.f32.partialorder %v32_v49, inf  ;;  %vm60_vm9 = vcmp.eq.f32.partialorder %v32_v49, 0.0 }
  0x9d   :  { %223 = vrsqrt.f32 %v32_v49  ;;  %v61_v59 = vand.u32 2147483648, %v32_v49  ;;  %v143_v60 = vand.u32 2147483648, %v114_v48  ;;  %vm142_vm11 = vcmp.eq.f32.partialorder %v114_v48, 0.0 }
  0x9f   :  { %v117_v50 = vpop.xlane.xlu1 %116  ;;  %v35_v51 = vpop.xlane.xlu0 %34 }
  0xa0   :  { %225 = vrsqrt.f32 %v117_v50  ;;  %vm65_vm10 = vcmp.eq.f32.partialorder %v35_v51, inf  ;;  %v68_v62 = vand.u32 2147483648, %v35_v51  ;;  %vm147_vm12 = vcmp.eq.f32.partialorder %v117_v50, inf }
  0xa1   :  { %227 = vrsqrt.f32 %v35_v51  ;;  %v150_v2 = vand.u32 2147483648, %v117_v50  ;;  %vm149_vm13 = vcmp.eq.f32.partialorder %v117_v50, 0.0  ;;  %vm67_vm14 = vcmp.eq.f32.partialorder %v35_v51, 0.0 }
  0xa3   :  { %v47_v3 = vpop.xlane.xlu0 %46  ;;  %v129_v22 = vpop.xlane.xlu1 %128 }
  0xa4   :  { %v48_v6 = vrot.slane %v47_v3, 4  ;;  %v130_v24 = vrot.slane %v129_v22, 4 }
  0xa6   :  { %v49_v12 = vadd.f32 %v48_v6, %v47_v3  ;;  %v131_v26 = vadd.f32 %v130_v24, %v129_v22 }
  0xa8   :  { %v50_v17 = vrot.slane %v49_v12, 2  ;;  %v132_v31 = vrot.slane %v131_v26, 2 }
  0xa9   :  { %v222_v52 = vpop.eup %221 }
  0xaa   :  { %v224_v53 = vpop.eup %223  ;;  %v139_v54 = vmul.f32 %v222_v52, %v114_v48  ;;  %v51_v18 = vadd.f32 %v50_v17, %v49_v12  ;;  %v133_v40 = vadd.f32 %v132_v31, %v131_v26 }
  0xab   :  { %v57_v55 = vmul.f32 %v224_v53, %v32_v49 }
  0xac   :  { %v141_v56 = vsel %vm140_vm6, %v114_v48, %v139_v54  ;;  %v52_v19 = vrot.slane %v51_v18, 1  ;;  %v134_v48 = vrot.slane %v133_v40, 1 }
  0xad   :  { %v226_v57 = vpop.eup %225  ;;  %v59_v58 = vsel %vm58_vm7, %v32_v49, %v57_v55  ;;  %v144_v1 = vsel %vm142_vm11, %v143_v60, %v141_v56 }
  0xae   :  { %v228_v61 = vpop.eup %227  ;;  %v146_v63 = vmul.f32 %v226_v57, %v117_v50  ;;  %v62_v4 = vsel %vm60_vm9, %v61_v59, %v59_v58  ;;  %v152_v10 = vsel %vm70_vm8, %v144_v1, 0.0  ;;  %v53_v20 = vadd.f32 %v52_v19, %v51_v18 }
  0xaf   :  { %v64_v0 = vmul.f32 %v228_v61, %v35_v51  ;;  %v71_v13 = vsel %vm70_vm8, %v62_v4, 0.0  ;;  %v135_v53 = vadd.f32 %v134_v48, %v133_v40 }
  0xb0   :  { %v148_v5 = vsel %vm147_vm12, %v117_v50, %v146_v63  ;;  %201 = vpush %v53_v20 }
  0xb1   :  { %v66_v7 = vsel %vm65_vm10, %v35_v51, %v64_v0  ;;  %v151_v8 = vsel %vm149_vm13, %v150_v2, %v148_v5 }
  0xb2   :  { %v69_v9 = vsel %vm67_vm14, %v68_v62, %v66_v7  ;;  %v153_v11 = vsel %vm70_vm8, %v151_v8, 0.0 }
  0xb3   :  { %v72_v14 = vsel %vm70_vm8, %v69_v9, 0.0  ;;  %v154_v15 = vadd.f32 %v153_v11, %v152_v10 }
  0xb4   :  { %v73_v16 = vadd.f32 %v72_v14, %v71_v13 }
  0xb5   :  { %155 = vadd.xlane.f32.xlu0 %v154_v15 }
  0xb6   :  { %74 = vadd.xlane.f32.xlu1 %v73_v16 }
  0xba   :  { %173 = vadd.xlane.f32.xlu1 %v172_v47 }
  0xbd   :  { %v94_v21 = vpop.xlane.xlu0 %93 }
  0xbe   :  { %v95_v23 = vrot.slane %v94_v21, 4 }
  0xc0   :  { %v96_v25 = vadd.f32 %v95_v23, %v94_v21 }
  0xc2   :  { %v97_v28 = vrot.slane %v96_v25, 2 }
  0xc4   :  { %v98_v37 = vadd.f32 %v97_v28, %v96_v25 }
  0xc6   :  { %v99_v44 = vrot.slane %v98_v37, 1 }
  0xc8   :  { %v100_v51 = vadd.f32 %v99_v44, %v98_v37 }
  0xe1   :  { %s202_s0 = spop %201 }
  0xe2   :  { %s55_s13 = smul.f32 2.0, %s202_s0 }
 0x13e   :  { %v156_v27 = vpop.xlane.xlu0 %155 }
 0x13f   :  { %v75_v29 = vpop.xlane.xlu1 %74  ;;  %v157_v30 = vrot.slane %v156_v27, 4 }
 0x140   :  { %v76_v32 = vrot.slane %v75_v29, 4 }
 0x141   :  { %v158_v33 = vadd.f32 %v157_v30, %v156_v27 }
 0x142   :  { %v77_v34 = vadd.f32 %v76_v32, %v75_v29 }
 0x143   :  { %v159_v35 = vrot.slane %v158_v33, 2  ;;  %v174_v36 = vpop.xlane.xlu1 %173 }
 0x144   :  { %v78_v38 = vrot.slane %v77_v34, 2  ;;  %v175_v39 = vrot.slane %v174_v36, 4 }
 0x145   :  { %v160_v41 = vadd.f32 %v159_v35, %v158_v33 }
 0x146   :  { %v176_v42 = vadd.f32 %v175_v39, %v174_v36  ;;  %v79_v43 = vadd.f32 %v78_v38, %v77_v34 }
 0x147   :  { %v161_v45 = vrot.slane %v160_v41, 1 }
 0x148   :  { %v177_v46 = vrot.slane %v176_v42, 2  ;;  %v80_v47 = vrot.slane %v79_v43, 1 }
 0x149   :  { %v162_v52 = vadd.f32 %v161_v45, %v160_v41 }
 0x14a   :  { %v178_v49 = vadd.f32 %v177_v46, %v176_v42  ;;  %v81_v50 = vadd.f32 %v80_v47, %v79_v43 }
 0x14c   :  { %203 = vpush %v81_v50  ;;  %v179_v54 = vrot.slane %v178_v49, 1 }
 0x14d   :  { %205 = vpush %v100_v51 }
 0x14e   :  { %207 = vpush %v135_v53  ;;  %v180_v55 = vadd.f32 %v179_v54, %v178_v49 }
 0x14f   :  { %209 = vpush %v162_v52 }
 0x150   :  { %211 = vpush %v180_v55 }
 0x17d   :  { %s204_s14 = spop %203 }
 0x17e   :  { %s83_s15 = ssub.f32 %s55_s13, %s204_s14  ;;  %s206_s16 = spop %205 }
 0x17f   :  { %s208_s17 = spop %207 }
 0x180   :  { %s102_s18 = ssub.f32 %s83_s15, %s206_s16  ;;  %s137_s19 = smul.f32 2.0, %s208_s17 }
 0x181   :  { %s210_s20 = spop %209 }
 0x182   :  { %104 = sst [smem:[#allocation5]] %s102_s18  ;;  %s212_s24 = spop %211 }
 0x183   :  { %s164_s25 = ssub.f32 %s137_s19, %s210_s20 }
 0x185   :  { %s182_s26 = ssub.f32 %s164_s25, %s212_s24 }
 0x187   :  { %184 = sst [smem:[#allocation5 + $0x80]] %s182_s26 }
 0x188   :  { %260 = shalt.err (!%p257_p9)
}
 0x189   :  { %s268_s28 = smov [#allocation5]  }
 0x18a   :  { %194 = dma.smem_to_vmem %s268_s28, 32, %s192_s23, [#allocation4]  }
 0x18b   :  { %263 = dma.done.wait [#allocation4], 32  }
 0x18c   :  { %264 = vsyncadd [#allocation4], 4294967264 }
 0x18d   :  { %198 = sfence }
 0x18e   :  { %199 = vsyncpa [#allocation3], 1 }
 0x18f   :  { %200 = vsyncpa [#allocation4], 1 }

</bundles_post_ra>
